<compile_context>
chip_gen: v7x
topology: tpu7x:2x2x1
jax: 0.10.0
libtpu: 0.0.40
codegen_flags: <defaults>
</compile_context>

<pallas_src>
import functools

import jax
import jax.numpy as jnp
import numpy as np
from jax import lax
from jax.experimental import pallas as pl
from jax.experimental.pallas import tpu as pltpu

EPS = 1e-5
HALO = 128          # lane-aligned halo width on each side of the conv2 scratch


def resblock2_kernel(x_ref, s1_ref, b1_ref, w1_ref,
                     b2_ref, w2_ref,
                     b3_ref, w3_ref,
                     o_ref, pad_ref, *, W):
    B, CI, P = x_ref.shape
    CF = w1_ref.shape[0]

    # Hoisted parameter loads / constants (shared by the unrolled batch loop).
    s1 = s1_ref[...]; b1 = b1_ref[...]          # (CI, 1)
    b2 = b2_ref[...]; b3 = b3_ref[...]          # (CF, 1)
    w1 = w1_ref[...]                             # (CF, CI)    bf16 (s2 folded)
    w2 = w2_ref[...]                             # (CF, 9*CF)  bf16 (s3 folded)
    w3 = w3_ref[...]                             # (CI, CF)    bf16 (0.2 folded)

    # Column-boundary masks for the 3x3 taps (row boundaries are handled by
    # the zero halo of pad_ref). Hoisted out of all loops.
    ww = lax.broadcasted_iota(jnp.int32, (1, P), 1) % W
    left_ok = ww >= 1                            # valid positions for kw == 0
    right_ok = ww <= W - 2                       # valid positions for kw == 2

    # Zero only the two 128-lane halo strips (aligned, unmasked stores); the
    # interior is fully overwritten for every image below. Re-zeroed every
    # grid step so "parallel" megacore sharding stays correct.
    pad_ref[:, :HALO] = jnp.zeros((CF, HALO), jnp.float32)
    pad_ref[:, HALO + P:] = jnp.zeros((CF, HALO), jnp.float32)

    for b in range(B):
        x = x_ref[b]                                            # (CI, P) f32

        # BN1 (folded affine) + ReLU; keep residual.
        y = jnp.maximum(x * s1 + b1, 0.0)
        r = y

        # conv1: 1x1, CI -> CF (channel matmul, lane axis = spatial).
        # BN2 scale is pre-folded into w1, so only the shift + ReLU remain.
        y1 = jnp.dot(w1, y.astype(jnp.bfloat16),
                     preferred_element_type=jnp.float32)        # (CF, P)
        y2 = jnp.maximum(y1 + b2, 0.0)                          # (CF, P)

        # conv2: 3x3 "same" conv as a single im2col matmul (K = 9*CF).
        pad_ref[:, HALO:HALO + P] = y2         # lane-aligned, unmasked store
        taps = []
        for kh in range(3):
            for kw in range(3):
                off = (kh - 1) * W + (kw - 1)
                if off == 0:
                    t = y2                               # center tap: no reload
                else:
                    t = pad_ref[:, HALO + off:HALO + off + P]    # (CF, P)
                if kw == 0:
                    t = jnp.where(left_ok, t, 0.0)
                elif kw == 2:
                    t = jnp.where(right_ok, t, 0.0)
                taps.append(t.astype(jnp.bfloat16))
        slab = jnp.concatenate(taps, axis=0)                    # (9*CF, P) bf16
        # BN3 scale is pre-folded into w2, so only the shift + ReLU remain.
        y2c = jnp.dot(w2, slab,
                      preferred_element_type=jnp.float32)       # (CF, P)
        y3 = jnp.maximum(y2c + b3, 0.0)

        # conv3: 1x1, CF -> CI (0.2 pre-folded into w3), residual add.
        y4 = jnp.dot(w3, y3.astype(jnp.bfloat16),
                     preferred_element_type=jnp.float32)        # (CI, P)
        o_ref[b] = y4 + r


def _fold_bn(gamma, beta, mean, var):
    scale = (gamma / jnp.sqrt(var + EPS)).astype(jnp.float32)
    shift = (beta - mean * scale).astype(jnp.float32)
    return scale, shift


def resblock2_forward(x_nchw, p, b_tile=8):
    N, CI, H, W = x_nchw.shape
    P = H * W
    CF = p["w1"].shape[1]
    assert W + 1 <= HALO

    B = max(1, min(b_tile, N))
    G = -(-N // B)
    n_pad = G * B

    x = x_nchw.reshape(N, CI, P).astype(jnp.float32)   # zero-copy reshape
    if n_pad != N:
        x = jnp.concatenate(
            [x, jnp.zeros((n_pad - N, CI, P), jnp.float32)], axis=0)

    s1, b1 = _fold_bn(p["bn1_g"], p["bn1_b"], p["bn1_m"], p["bn1_v"])
    s2, b2 = _fold_bn(p["bn2_g"], p["bn2_b"], p["bn2_m"], p["bn2_v"])
    s3, b3 = _fold_bn(p["bn3_g"], p["bn3_b"], p["bn3_m"], p["bn3_v"])

    # Weights pre-transposed to (out, in) / im2col layout, with the following
    # folds done once in f32 before the bf16 cast:
    #   w1 <- s2 * w1   (BN2 scale),  w2 <- s3 * w2 (BN3 scale),  w3 <- 0.2*w3
    w1t = jnp.asarray(p["w1"], jnp.float32).T                     # (CF, CI)
    w1f = (s2[:, None] * w1t).astype(jnp.bfloat16)

    w2r = (jnp.transpose(jnp.asarray(p["w2"], jnp.float32), (3, 0, 1, 2))
           .reshape(CF, 9 * CF))                                  # (CF, 9CF)
    w2f = (s3[:, None] * w2r).astype(jnp.bfloat16)

    w3t = jnp.asarray(p["w3"], jnp.float32).T                     # (CI, CF)
    w3f = (0.2 * w3t).astype(jnp.bfloat16)

    s1c = s1.reshape(CI, 1); b1c = b1.reshape(CI, 1)
    b2c = b2.reshape(CF, 1); b3c = b3.reshape(CF, 1)

    def rep(arr):
        return pl.BlockSpec(arr.shape, lambda n, _nd=arr.ndim: (0,) * _nd)

    grid_spec = pltpu.PrefetchScalarGridSpec(
        num_scalar_prefetch=0,
        grid=(G,),
        in_specs=[
            pl.BlockSpec((B, CI, P), lambda n: (n, 0, 0)),
            rep(s1c), rep(b1c), rep(w1f),
            rep(b2c), rep(w2f),
            rep(b3c), rep(w3f),
        ],
        out_specs=pl.BlockSpec((B, CI, P), lambda n: (n, 0, 0)),
        scratch_shapes=[pltpu.VMEM((CF, P + 2 * HALO), jnp.float32)],
    )

    out = pl.pallas_call(
        functools.partial(resblock2_kernel, W=W),
        out_shape=jax.ShapeDtypeStruct((n_pad, CI, P), jnp.float32),
        grid_spec=grid_spec,
        compiler_params=pltpu.CompilerParams(
            dimension_semantics=("parallel",)),
    )(x, s1c, b1c, w1f, b2c, w2f, b3c, w3f)

    return out[:N].reshape(N, CI, H, W)


# -------------------- pure-JAX reference (for verification) --------------------
def _bn_eval(x, g, b, m, v):
    return (x - m) / jnp.sqrt(v + EPS) * g + b


def resblock2_reference(x_nchw, p):
    x = jnp.transpose(x_nchw, (0, 2, 3, 1)).astype(jnp.float32)
    dn = ("NHWC", "HWIO", "NHWC")
    conv = lambda z, w, pad: lax.conv_general_dilated(
        z, w, (1, 1), pad, dimension_numbers=dn)
    CI, CF = p["w1"].shape

    y = jax.nn.relu(_bn_eval(x, p["bn1_g"], p["bn1_b"], p["bn1_m"], p["bn1_v"]))
    r = y
    y = conv(y, p["w1"].reshape(1, 1, CI, CF), "VALID")
    y = jax.nn.relu(_bn_eval(y, p["bn2_g"], p["bn2_b"], p["bn2_m"], p["bn2_v"]))
    y = conv(y, p["w2"], "SAME")
    y = jax.nn.relu(_bn_eval(y, p["bn3_g"], p["bn3_b"], p["bn3_m"], p["bn3_v"]))
    y = conv(y, p["w3"].reshape(1, 1, CF, CI), "VALID") * 0.2
    out = y + r
    return jnp.transpose(out, (0, 3, 1, 2))


if __name__ == "__main__":
    key = jax.random.PRNGKey(0)
    N, CI, CF, H, W = 2, 8, 16, 16, 16
    ks = jax.random.split(key, 16)

    params = {
        # bn (BatchNorm2d(ni))
        "bn1_g": jax.random.uniform(ks[0], (CI,), minval=0.5, maxval=1.5),
        "bn1_b": jax.random.normal(ks[1], (CI,)) * 0.1,
        "bn1_m": jax.random.normal(ks[2], (CI,)) * 0.1,
        "bn1_v": jax.random.uniform(ks[3], (CI,), minval=0.5, maxval=1.5),
        # conv1: Conv2d(ni, nf, 1, bias=False) stored as (in, out)
        "w1": jax.random.normal(ks[4], (CI, CF)) / np.sqrt(CI),
        # conv2 = BN(nf) + ReLU + Conv2d(nf, nf, 3, pad=1, bias=False)
        "bn2_g": jax.random.uniform(ks[5], (CF,), minval=0.5, maxval=1.5),
        "bn2_b": jax.random.normal(ks[6], (CF,)) * 0.1,
        "bn2_m": jax.random.normal(ks[7], (CF,)) * 0.1,
        "bn2_v": jax.random.uniform(ks[8], (CF,), minval=0.5, maxval=1.5),
        # stored as HWIO: (kh, kw, in, out)
        "w2": jax.random.normal(ks[9], (3, 3, CF, CF)) / np.sqrt(9 * CF),
        # conv3 = BN(nf) + ReLU + Conv2d(nf, ni, 1, bias=False)
        "bn3_g": jax.random.uniform(ks[10], (CF,), minval=0.5, maxval=1.5),
        "bn3_b": jax.random.normal(ks[11], (CF,)) * 0.1,
        "bn3_m": jax.random.normal(ks[12], (CF,)) * 0.1,
        "bn3_v": jax.random.uniform(ks[13], (CF,), minval=0.5, maxval=1.5),
        "w3": jax.random.normal(ks[14], (CF, CI)) / np.sqrt(CF),
    }

    x = jax.random.normal(ks[15], (N, CI, H, W), jnp.float32)

    out = resblock2_forward(x, params)
    out = jax.block_until_ready(out)

    ref = resblock2_reference(x, params)
    # bf16 MXU inputs (f32 accumulate) -> loosened tolerance.
    np.testing.assert_allclose(np.asarray(out), np.asarray(ref),
                               atol=2e-2, rtol=2e-2)
    print("KERNEL_OK")
</pallas_src>

<mosaic_0001>
module attributes {stable_mosaic.version = 11 : i64} {
  func.func @resblock2_kernel(%arg0: i32, %arg1: memref<2x8x256xf32, #tpu.memory_space<vmem>>, %arg2: memref<8x1xf32, #tpu.memory_space<vmem>>, %arg3: memref<8x1xf32, #tpu.memory_space<vmem>>, %arg4: memref<16x8xbf16, #tpu.memory_space<vmem>>, %arg5: memref<16x1xf32, #tpu.memory_space<vmem>>, %arg6: memref<16x144xbf16, #tpu.memory_space<vmem>>, %arg7: memref<16x1xf32, #tpu.memory_space<vmem>>, %arg8: memref<8x16xbf16, #tpu.memory_space<vmem>>, %arg9: memref<2x8x256xf32, #tpu.memory_space<vmem>>, %arg10: memref<16x512xf32, #tpu.memory_space<vmem>>) attributes {dimension_semantics = [#tpu.dimension_semantics<parallel>], iteration_bounds = array<i64: 1>, scalar_prefetch = 0 : i64, scratch_operands = 1 : i64, tpu.core_type = #tpu.core_type<tc>, window_params = [{transform_indices = @transform_0, window_bounds = array<i64: 2, 8, 256>}, {pipeline_mode = #tpu.pipeline_mode<synchronous>, transform_indices = @transform_1, window_bounds = array<i64: 8, 1>}, {pipeline_mode = #tpu.pipeline_mode<synchronous>, transform_indices = @transform_2, window_bounds = array<i64: 8, 1>}, {pipeline_mode = #tpu.pipeline_mode<synchronous>, transform_indices = @transform_3, window_bounds = array<i64: 16, 8>}, {pipeline_mode = #tpu.pipeline_mode<synchronous>, transform_indices = @transform_4, window_bounds = array<i64: 16, 1>}, {pipeline_mode = #tpu.pipeline_mode<synchronous>, transform_indices = @transform_5, window_bounds = array<i64: 16, 144>}, {pipeline_mode = #tpu.pipeline_mode<synchronous>, transform_indices = @transform_6, window_bounds = array<i64: 16, 1>}, {pipeline_mode = #tpu.pipeline_mode<synchronous>, transform_indices = @transform_7, window_bounds = array<i64: 8, 16>}, {transform_indices = @transform_8, window_bounds = array<i64: 2, 8, 256>}]} {
    %c0 = arith.constant 0 : index
    %c0_0 = arith.constant 0 : index
    %0 = vector.load %arg2[%c0, %c0_0] : memref<8x1xf32, #tpu.memory_space<vmem>>, vector<8x1xf32>
    %c0_1 = arith.constant 0 : index
    %c0_2 = arith.constant 0 : index
    %1 = vector.load %arg3[%c0_1, %c0_2] : memref<8x1xf32, #tpu.memory_space<vmem>>, vector<8x1xf32>
    %c0_3 = arith.constant 0 : index
    %c0_4 = arith.constant 0 : index
    %2 = vector.load %arg5[%c0_3, %c0_4] : memref<16x1xf32, #tpu.memory_space<vmem>>, vector<16x1xf32>
    %c0_5 = arith.constant 0 : index
    %c0_6 = arith.constant 0 : index
    %3 = vector.load %arg7[%c0_5, %c0_6] : memref<16x1xf32, #tpu.memory_space<vmem>>, vector<16x1xf32>
    %c0_7 = arith.constant 0 : index
    %c0_8 = arith.constant 0 : index
    %4 = vector.load %arg4[%c0_7, %c0_8] : memref<16x8xbf16, #tpu.memory_space<vmem>>, vector<16x8xbf16>
    %c0_9 = arith.constant 0 : index
    %c0_10 = arith.constant 0 : index
    %5 = vector.load %arg6[%c0_9, %c0_10] : memref<16x144xbf16, #tpu.memory_space<vmem>>, vector<16x144xbf16>
    %c0_11 = arith.constant 0 : index
    %c0_12 = arith.constant 0 : index
    %6 = vector.load %arg8[%c0_11, %c0_12] : memref<8x16xbf16, #tpu.memory_space<vmem>>, vector<8x16xbf16>
    %7 = tpu.iota {dimensions = array<i32: 1>} : vector<1x256xi32>
    %c16_i32 = arith.constant 16 : i32
    %c0_i32 = arith.constant 0 : i32
    %8 = arith.cmpi eq, %c16_i32, %c0_i32 : i32
    %c1_i32 = arith.constant 1 : i32
    %9 = arith.select %8, %c1_i32, %c16_i32 : i32
    %10 = vector.broadcast %9 : i32 to vector<1x256xi32>
    %11 = arith.remsi %7, %10 : vector<1x256xi32>
    %c0_i32_13 = arith.constant 0 : i32
    %12 = vector.broadcast %c0_i32_13 : i32 to vector<1x256xi32>
    %13 = arith.cmpi ne, %11, %12 : vector<1x256xi32>
    %c0_i32_14 = arith.constant 0 : i32
    %14 = vector.broadcast %c0_i32_14 : i32 to vector<1x256xi32>
    %15 = arith.cmpi slt, %11, %14 : vector<1x256xi32>
    %c0_i32_15 = arith.constant 0 : i32
    %16 = arith.cmpi slt, %9, %c0_i32_15 : i32
    %17 = vector.broadcast %16 : i1 to vector<1x256xi1>
    %18 = vector.broadcast %17 : vector<1x256xi1> to vector<1x256xi1>
    %19 = arith.xori %15, %18 : vector<1x256xi1>
    %20 = arith.andi %19, %13 : vector<1x256xi1>
    %21 = vector.broadcast %9 : i32 to vector<1x256xi32>
    %22 = arith.addi %11, %21 : vector<1x256xi32>
    %23 = arith.select %20, %22, %11 : vector<1x256xi1>, vector<1x256xi32>
    %c1_i32_16 = arith.constant 1 : i32
    %24 = vector.broadcast %c1_i32_16 : i32 to vector<1x256xi32>
    %25 = arith.cmpi sge, %23, %24 : vector<1x256xi32>
    %c14_i32 = arith.constant 14 : i32
    %26 = vector.broadcast %c14_i32 : i32 to vector<1x256xi32>
    %27 = arith.cmpi sle, %23, %26 : vector<1x256xi32>
    %cst = arith.constant 0.000000e+00 : f32
    %28 = vector.broadcast %cst : f32 to vector<16x128xf32>
    %c0_17 = arith.constant 0 : index
    %c0_18 = arith.constant 0 : index
    %29 = vector.load %arg10[%c0_17, %c0_18] : memref<16x512xf32, #tpu.memory_space<vmem>>, vector<16x128xf32>
    tpu.vector_store %arg10[%c0_17, %c0_18], %28 {strides = array<i32>} : memref<16x512xf32, #tpu.memory_space<vmem>>, vector<16x128xf32>,
    %cst_19 = arith.constant 0.000000e+00 : f32
    %30 = vector.broadcast %cst_19 : f32 to vector<16x128xf32>
    %c0_20 = arith.constant 0 : index
    %c384 = arith.constant 384 : index
    %31 = vector.load %arg10[%c0_20, %c384] : memref<16x512xf32, #tpu.memory_space<vmem>>, vector<16x128xf32>
    tpu.vector_store %arg10[%c0_20, %c384], %30 {strides = array<i32>} : memref<16x512xf32, #tpu.memory_space<vmem>>, vector<16x128xf32>,
    %c0_21 = arith.constant 0 : index
    %c0_22 = arith.constant 0 : index
    %c0_23 = arith.constant 0 : index
    %32 = vector.load %arg1[%c0_21, %c0_22, %c0_23] : memref<2x8x256xf32, #tpu.memory_space<vmem>>, vector<1x8x256xf32>
    %33 = vector.shape_cast %32 : vector<1x8x256xf32> to vector<8x256xf32>
    %34 = vector.broadcast %0 : vector<8x1xf32> to vector<8x256xf32>
    %35 = arith.mulf %33, %34 : vector<8x256xf32>
    %36 = vector.broadcast %1 : vector<8x1xf32> to vector<8x256xf32>
    %37 = arith.addf %35, %36 : vector<8x256xf32>
    %cst_24 = arith.constant 0.000000e+00 : f32
    %38 = vector.broadcast %cst_24 : f32 to vector<8x256xf32>
    %39 = arith.maximumf %37, %38 : vector<8x256xf32>
    %40 = arith.truncf %39 : vector<8x256xf32> to vector<8x256xbf16>
    %cst_25 = arith.constant dense<0.000000e+00> : vector<16x256xf32>
    %41 = tpu.matmul %4, %40, %cst_25 {dimension_numbers = #tpu.dot_dimension_numbers<[1], [0], [0], [1], [0, 0, 1, 1], [], []>} : vector<16x8xbf16>, vector<8x256xbf16>, vector<16x256xf32> -> vector<16x256xf32>
    %42 = vector.broadcast %2 : vector<16x1xf32> to vector<16x256xf32>
    %43 = arith.addf %41, %42 : vector<16x256xf32>
    %cst_26 = arith.constant 0.000000e+00 : f32
    %44 = vector.broadcast %cst_26 : f32 to vector<16x256xf32>
    %45 = arith.maximumf %43, %44 : vector<16x256xf32>
    %c0_27 = arith.constant 0 : index
    %c128 = arith.constant 128 : index
    %46 = vector.load %arg10[%c0_27, %c128] : memref<16x512xf32, #tpu.memory_space<vmem>>, vector<16x256xf32>
    tpu.vector_store %arg10[%c0_27, %c128], %45 {strides = array<i32>} : memref<16x512xf32, #tpu.memory_space<vmem>>, vector<16x256xf32>,
    %c0_28 = arith.constant 0 : index
    %c111 = arith.constant 111 : index
    %47 = vector.load %arg10[%c0_28, %c111] : memref<16x512xf32, #tpu.memory_space<vmem>>, vector<16x256xf32>
    %cst_29 = arith.constant 0.000000e+00 : f32
    %48 = vector.shape_cast %25 : vector<1x256xi1> to vector<1x256xi1>
    %49 = vector.broadcast %48 : vector<1x256xi1> to vector<16x256xi1>
    %50 = vector.broadcast %cst_29 : f32 to vector<16x256xf32>
    %51 = arith.select %49, %47, %50 : vector<16x256xi1>, vector<16x256xf32>
    %52 = arith.truncf %51 : vector<16x256xf32> to vector<16x256xbf16>
    %c0_30 = arith.constant 0 : index
    %c112 = arith.constant 112 : index
    %53 = vector.load %arg10[%c0_30, %c112] : memref<16x512xf32, #tpu.memory_space<vmem>>, vector<16x256xf32>
    %54 = arith.truncf %53 : vector<16x256xf32> to vector<16x256xbf16>
    %c0_31 = arith.constant 0 : index
    %c113 = arith.constant 113 : index
    %55 = vector.load %arg10[%c0_31, %c113] : memref<16x512xf32, #tpu.memory_space<vmem>>, vector<16x256xf32>
    %cst_32 = arith.constant 0.000000e+00 : f32
    %56 = vector.shape_cast %27 : vector<1x256xi1> to vector<1x256xi1>
    %57 = vector.broadcast %56 : vector<1x256xi1> to vector<16x256xi1>
    %58 = vector.broadcast %cst_32 : f32 to vector<16x256xf32>
    %59 = arith.select %57, %55, %58 : vector<16x256xi1>, vector<16x256xf32>
    %60 = arith.truncf %59 : vector<16x256xf32> to vector<16x256xbf16>
    %c0_33 = arith.constant 0 : index
    %c127 = arith.constant 127 : index
    %61 = vector.load %arg10[%c0_33, %c127] : memref<16x512xf32, #tpu.memory_space<vmem>>, vector<16x256xf32>
    %cst_34 = arith.constant 0.000000e+00 : f32
    %62 = vector.shape_cast %25 : vector<1x256xi1> to vector<1x256xi1>
    %63 = vector.broadcast %62 : vector<1x256xi1> to vector<16x256xi1>
    %64 = vector.broadcast %cst_34 : f32 to vector<16x256xf32>
    %65 = arith.select %63, %61, %64 : vector<16x256xi1>, vector<16x256xf32>
    %66 = arith.truncf %65 : vector<16x256xf32> to vector<16x256xbf16>
    %67 = arith.truncf %45 : vector<16x256xf32> to vector<16x256xbf16>
    %c0_35 = arith.constant 0 : index
    %c129 = arith.constant 129 : index
    %68 = vector.load %arg10[%c0_35, %c129] : memref<16x512xf32, #tpu.memory_space<vmem>>, vector<16x256xf32>
    %cst_36 = arith.constant 0.000000e+00 : f32
    %69 = vector.shape_cast %27 : vector<1x256xi1> to vector<1x256xi1>
    %70 = vector.broadcast %69 : vector<1x256xi1> to vector<16x256xi1>
    %71 = vector.broadcast %cst_36 : f32 to vector<16x256xf32>
    %72 = arith.select %70, %68, %71 : vector<16x256xi1>, vector<16x256xf32>
    %73 = arith.truncf %72 : vector<16x256xf32> to vector<16x256xbf16>
    %c0_37 = arith.constant 0 : index
    %c143 = arith.constant 143 : index
    %74 = vector.load %arg10[%c0_37, %c143] : memref<16x512xf32, #tpu.memory_space<vmem>>, vector<16x256xf32>
    %cst_38 = arith.constant 0.000000e+00 : f32
    %75 = vector.shape_cast %25 : vector<1x256xi1> to vector<1x256xi1>
    %76 = vector.broadcast %75 : vector<1x256xi1> to vector<16x256xi1>
    %77 = vector.broadcast %cst_38 : f32 to vector<16x256xf32>
    %78 = arith.select %76, %74, %77 : vector<16x256xi1>, vector<16x256xf32>
    %79 = arith.truncf %78 : vector<16x256xf32> to vector<16x256xbf16>
    %c0_39 = arith.constant 0 : index
    %c144 = arith.constant 144 : index
    %80 = vector.load %arg10[%c0_39, %c144] : memref<16x512xf32, #tpu.memory_space<vmem>>, vector<16x256xf32>
    %81 = arith.truncf %80 : vector<16x256xf32> to vector<16x256xbf16>
    %c0_40 = arith.constant 0 : index
    %c145 = arith.constant 145 : index
    %82 = vector.load %arg10[%c0_40, %c145] : memref<16x512xf32, #tpu.memory_space<vmem>>, vector<16x256xf32>
    %cst_41 = arith.constant 0.000000e+00 : f32
    %83 = vector.shape_cast %27 : vector<1x256xi1> to vector<1x256xi1>
    %84 = vector.broadcast %83 : vector<1x256xi1> to vector<16x256xi1>
    %85 = vector.broadcast %cst_41 : f32 to vector<16x256xf32>
    %86 = arith.select %84, %82, %85 : vector<16x256xi1>, vector<16x256xf32>
    %87 = arith.truncf %86 : vector<16x256xf32> to vector<16x256xbf16>
    %88 = tpu.concatenate %52, %54, %60, %66, %67, %73, %79, %81, %87 in 0 : vector<16x256xbf16>, vector<16x256xbf16>, vector<16x256xbf16>, vector<16x256xbf16>, vector<16x256xbf16>, vector<16x256xbf16>, vector<16x256xbf16>, vector<16x256xbf16>, vector<16x256xbf16> -> vector<144x256xbf16>
    %cst_42 = arith.constant dense<0.000000e+00> : vector<16x256xf32>
    %89 = tpu.matmul %5, %88, %cst_42 {dimension_numbers = #tpu.dot_dimension_numbers<[1], [0], [0], [1], [0, 0, 1, 1], [], []>} : vector<16x144xbf16>, vector<144x256xbf16>, vector<16x256xf32> -> vector<16x256xf32>
    %90 = vector.broadcast %3 : vector<16x1xf32> to vector<16x256xf32>
    %91 = arith.addf %89, %90 : vector<16x256xf32>
    %cst_43 = arith.constant 0.000000e+00 : f32
    %92 = vector.broadcast %cst_43 : f32 to vector<16x256xf32>
    %93 = arith.maximumf %91, %92 : vector<16x256xf32>
    %94 = arith.truncf %93 : vector<16x256xf32> to vector<16x256xbf16>
    %cst_44 = arith.constant dense<0.000000e+00> : vector<8x256xf32>
    %95 = tpu.matmul %6, %94, %cst_44 {dimension_numbers = #tpu.dot_dimension_numbers<[1], [0], [0], [1], [0, 0, 1, 1], [], []>} : vector<8x16xbf16>, vector<16x256xbf16>, vector<8x256xf32> -> vector<8x256xf32>
    %96 = arith.addf %95, %39 : vector<8x256xf32>
    %c0_45 = arith.constant 0 : index
    %c0_46 = arith.constant 0 : index
    %c0_47 = arith.constant 0 : index
    %97 = vector.load %arg9[%c0_45, %c0_46, %c0_47] : memref<2x8x256xf32, #tpu.memory_space<vmem>>, vector<1x8x256xf32>
    %98 = vector.shape_cast %97 : vector<1x8x256xf32> to vector<8x256xf32>
    %99 = vector.shape_cast %96 : vector<8x256xf32> to vector<1x8x256xf32>
    tpu.vector_store %arg9[%c0_45, %c0_46, %c0_47], %99 {strides = array<i32>} : memref<2x8x256xf32, #tpu.memory_space<vmem>>, vector<1x8x256xf32>,
    %c1 = arith.constant 1 : index
    %c0_48 = arith.constant 0 : index
    %c0_49 = arith.constant 0 : index
    %100 = vector.load %arg1[%c1, %c0_48, %c0_49] : memref<2x8x256xf32, #tpu.memory_space<vmem>>, vector<1x8x256xf32>
    %101 = vector.shape_cast %100 : vector<1x8x256xf32> to vector<8x256xf32>
    %102 = vector.broadcast %0 : vector<8x1xf32> to vector<8x256xf32>
    %103 = arith.mulf %101, %102 : vector<8x256xf32>
    %104 = vector.broadcast %1 : vector<8x1xf32> to vector<8x256xf32>
    %105 = arith.addf %103, %104 : vector<8x256xf32>
    %cst_50 = arith.constant 0.000000e+00 : f32
    %106 = vector.broadcast %cst_50 : f32 to vector<8x256xf32>
    %107 = arith.maximumf %105, %106 : vector<8x256xf32>
    %108 = arith.truncf %107 : vector<8x256xf32> to vector<8x256xbf16>
    %cst_51 = arith.constant dense<0.000000e+00> : vector<16x256xf32>
    %109 = tpu.matmul %4, %108, %cst_51 {dimension_numbers = #tpu.dot_dimension_numbers<[1], [0], [0], [1], [0, 0, 1, 1], [], []>} : vector<16x8xbf16>, vector<8x256xbf16>, vector<16x256xf32> -> vector<16x256xf32>
    %110 = vector.broadcast %2 : vector<16x1xf32> to vector<16x256xf32>
    %111 = arith.addf %109, %110 : vector<16x256xf32>
    %cst_52 = arith.constant 0.000000e+00 : f32
    %112 = vector.broadcast %cst_52 : f32 to vector<16x256xf32>
    %113 = arith.maximumf %111, %112 : vector<16x256xf32>
    %c0_53 = arith.constant 0 : index
    %c128_54 = arith.constant 128 : index
    %114 = vector.load %arg10[%c0_53, %c128_54] : memref<16x512xf32, #tpu.memory_space<vmem>>, vector<16x256xf32>
    tpu.vector_store %arg10[%c0_53, %c128_54], %113 {strides = array<i32>} : memref<16x512xf32, #tpu.memory_space<vmem>>, vector<16x256xf32>,
    %c0_55 = arith.constant 0 : index
    %c111_56 = arith.constant 111 : index
    %115 = vector.load %arg10[%c0_55, %c111_56] : memref<16x512xf32, #tpu.memory_space<vmem>>, vector<16x256xf32>
    %cst_57 = arith.constant 0.000000e+00 : f32
    %116 = vector.shape_cast %25 : vector<1x256xi1> to vector<1x256xi1>
    %117 = vector.broadcast %116 : vector<1x256xi1> to vector<16x256xi1>
    %118 = vector.broadcast %cst_57 : f32 to vector<16x256xf32>
    %119 = arith.select %117, %115, %118 : vector<16x256xi1>, vector<16x256xf32>
    %120 = arith.truncf %119 : vector<16x256xf32> to vector<16x256xbf16>
    %c0_58 = arith.constant 0 : index
    %c112_59 = arith.constant 112 : index
    %121 = vector.load %arg10[%c0_58, %c112_59] : memref<16x512xf32, #tpu.memory_space<vmem>>, vector<16x256xf32>
    %122 = arith.truncf %121 : vector<16x256xf32> to vector<16x256xbf16>
    %c0_60 = arith.constant 0 : index
    %c113_61 = arith.constant 113 : index
    %123 = vector.load %arg10[%c0_60, %c113_61] : memref<16x512xf32, #tpu.memory_space<vmem>>, vector<16x256xf32>
    %cst_62 = arith.constant 0.000000e+00 : f32
    %124 = vector.shape_cast %27 : vector<1x256xi1> to vector<1x256xi1>
    %125 = vector.broadcast %124 : vector<1x256xi1> to vector<16x256xi1>
    %126 = vector.broadcast %cst_62 : f32 to vector<16x256xf32>
    %127 = arith.select %125, %123, %126 : vector<16x256xi1>, vector<16x256xf32>
    %128 = arith.truncf %127 : vector<16x256xf32> to vector<16x256xbf16>
    %c0_63 = arith.constant 0 : index
    %c127_64 = arith.constant 127 : index
    %129 = vector.load %arg10[%c0_63, %c127_64] : memref<16x512xf32, #tpu.memory_space<vmem>>, vector<16x256xf32>
    %cst_65 = arith.constant 0.000000e+00 : f32
    %130 = vector.shape_cast %25 : vector<1x256xi1> to vector<1x256xi1>
    %131 = vector.broadcast %130 : vector<1x256xi1> to vector<16x256xi1>
    %132 = vector.broadcast %cst_65 : f32 to vector<16x256xf32>
    %133 = arith.select %131, %129, %132 : vector<16x256xi1>, vector<16x256xf32>
    %134 = arith.truncf %133 : vector<16x256xf32> to vector<16x256xbf16>
    %135 = arith.truncf %113 : vector<16x256xf32> to vector<16x256xbf16>
    %c0_66 = arith.constant 0 : index
    %c129_67 = arith.constant 129 : index
    %136 = vector.load %arg10[%c0_66, %c129_67] : memref<16x512xf32, #tpu.memory_space<vmem>>, vector<16x256xf32>
    %cst_68 = arith.constant 0.000000e+00 : f32
    %137 = vector.shape_cast %27 : vector<1x256xi1> to vector<1x256xi1>
    %138 = vector.broadcast %137 : vector<1x256xi1> to vector<16x256xi1>
    %139 = vector.broadcast %cst_68 : f32 to vector<16x256xf32>
    %140 = arith.select %138, %136, %139 : vector<16x256xi1>, vector<16x256xf32>
    %141 = arith.truncf %140 : vector<16x256xf32> to vector<16x256xbf16>
    %c0_69 = arith.constant 0 : index
    %c143_70 = arith.constant 143 : index
    %142 = vector.load %arg10[%c0_69, %c143_70] : memref<16x512xf32, #tpu.memory_space<vmem>>, vector<16x256xf32>
    %cst_71 = arith.constant 0.000000e+00 : f32
    %143 = vector.shape_cast %25 : vector<1x256xi1> to vector<1x256xi1>
    %144 = vector.broadcast %143 : vector<1x256xi1> to vector<16x256xi1>
    %145 = vector.broadcast %cst_71 : f32 to vector<16x256xf32>
    %146 = arith.select %144, %142, %145 : vector<16x256xi1>, vector<16x256xf32>
    %147 = arith.truncf %146 : vector<16x256xf32> to vector<16x256xbf16>
    %c0_72 = arith.constant 0 : index
    %c144_73 = arith.constant 144 : index
    %148 = vector.load %arg10[%c0_72, %c144_73] : memref<16x512xf32, #tpu.memory_space<vmem>>, vector<16x256xf32>
    %149 = arith.truncf %148 : vector<16x256xf32> to vector<16x256xbf16>
    %c0_74 = arith.constant 0 : index
    %c145_75 = arith.constant 145 : index
    %150 = vector.load %arg10[%c0_74, %c145_75] : memref<16x512xf32, #tpu.memory_space<vmem>>, vector<16x256xf32>
    %cst_76 = arith.constant 0.000000e+00 : f32
    %151 = vector.shape_cast %27 : vector<1x256xi1> to vector<1x256xi1>
    %152 = vector.broadcast %151 : vector<1x256xi1> to vector<16x256xi1>
    %153 = vector.broadcast %cst_76 : f32 to vector<16x256xf32>
    %154 = arith.select %152, %150, %153 : vector<16x256xi1>, vector<16x256xf32>
    %155 = arith.truncf %154 : vector<16x256xf32> to vector<16x256xbf16>
    %156 = tpu.concatenate %120, %122, %128, %134, %135, %141, %147, %149, %155 in 0 : vector<16x256xbf16>, vector<16x256xbf16>, vector<16x256xbf16>, vector<16x256xbf16>, vector<16x256xbf16>, vector<16x256xbf16>, vector<16x256xbf16>, vector<16x256xbf16>, vector<16x256xbf16> -> vector<144x256xbf16>
    %cst_77 = arith.constant dense<0.000000e+00> : vector<16x256xf32>
    %157 = tpu.matmul %5, %156, %cst_77 {dimension_numbers = #tpu.dot_dimension_numbers<[1], [0], [0], [1], [0, 0, 1, 1], [], []>} : vector<16x144xbf16>, vector<144x256xbf16>, vector<16x256xf32> -> vector<16x256xf32>
    %158 = vector.broadcast %3 : vector<16x1xf32> to vector<16x256xf32>
    %159 = arith.addf %157, %158 : vector<16x256xf32>
    %cst_78 = arith.constant 0.000000e+00 : f32
    %160 = vector.broadcast %cst_78 : f32 to vector<16x256xf32>
    %161 = arith.maximumf %159, %160 : vector<16x256xf32>
    %162 = arith.truncf %161 : vector<16x256xf32> to vector<16x256xbf16>
    %cst_79 = arith.constant dense<0.000000e+00> : vector<8x256xf32>
    %163 = tpu.matmul %6, %162, %cst_79 {dimension_numbers = #tpu.dot_dimension_numbers<[1], [0], [0], [1], [0, 0, 1, 1], [], []>} : vector<8x16xbf16>, vector<16x256xbf16>, vector<8x256xf32> -> vector<8x256xf32>
    %164 = arith.addf %163, %107 : vector<8x256xf32>
    %c1_80 = arith.constant 1 : index
    %c0_81 = arith.constant 0 : index
    %c0_82 = arith.constant 0 : index
    %165 = vector.load %arg9[%c1_80, %c0_81, %c0_82] : memref<2x8x256xf32, #tpu.memory_space<vmem>>, vector<1x8x256xf32>
    %166 = vector.shape_cast %165 : vector<1x8x256xf32> to vector<8x256xf32>
    %167 = vector.shape_cast %164 : vector<8x256xf32> to vector<1x8x256xf32>
    tpu.vector_store %arg9[%c1_80, %c0_81, %c0_82], %167 {strides = array<i32>} : memref<2x8x256xf32, #tpu.memory_space<vmem>>, vector<1x8x256xf32>,
    return
  }
  func.func @transform_0(%arg0: i32) -> (i32, i32, i32) {
    %c0_i32 = arith.constant 0 : i32
    %c0_i32_0 = arith.constant 0 : i32
    %c0_i32_1 = arith.constant 0 : i32
    return %arg0, %c0_i32, %c0_i32_0 : i32, i32, i32
  }
  func.func @transform_1(%arg0: i32) -> (i32, i32) {
    %c0_i32 = arith.constant 0 : i32
    %c0_i32_0 = arith.constant 0 : i32
    %c0_i32_1 = arith.constant 0 : i32
    return %c0_i32, %c0_i32_0 : i32, i32
  }
  func.func @transform_2(%arg0: i32) -> (i32, i32) {
    %c0_i32 = arith.constant 0 : i32
    %c0_i32_0 = arith.constant 0 : i32
    %c0_i32_1 = arith.constant 0 : i32
    return %c0_i32, %c0_i32_0 : i32, i32
  }
  func.func @transform_3(%arg0: i32) -> (i32, i32) {
    %c0_i32 = arith.constant 0 : i32
    %c0_i32_0 = arith.constant 0 : i32
    %c0_i32_1 = arith.constant 0 : i32
    return %c0_i32, %c0_i32_0 : i32, i32
  }
  func.func @transform_4(%arg0: i32) -> (i32, i32) {
    %c0_i32 = arith.constant 0 : i32
    %c0_i32_0 = arith.constant 0 : i32
    %c0_i32_1 = arith.constant 0 : i32
    return %c0_i32, %c0_i32_0 : i32, i32
  }
  func.func @transform_5(%arg0: i32) -> (i32, i32) {
    %c0_i32 = arith.constant 0 : i32
    %c0_i32_0 = arith.constant 0 : i32
    %c0_i32_1 = arith.constant 0 : i32
    return %c0_i32, %c0_i32_0 : i32, i32
  }
  func.func @transform_6(%arg0: i32) -> (i32, i32) {
    %c0_i32 = arith.constant 0 : i32
    %c0_i32_0 = arith.constant 0 : i32
    %c0_i32_1 = arith.constant 0 : i32
    return %c0_i32, %c0_i32_0 : i32, i32
  }
  func.func @transform_7(%arg0: i32) -> (i32, i32) {
    %c0_i32 = arith.constant 0 : i32
    %c0_i32_0 = arith.constant 0 : i32
    %c0_i32_1 = arith.constant 0 : i32
    return %c0_i32, %c0_i32_0 : i32, i32
  }
  func.func @transform_8(%arg0: i32) -> (i32, i32, i32) {
    %c0_i32 = arith.constant 0 : i32
    %c0_i32_0 = arith.constant 0 : i32
    %c0_i32_1 = arith.constant 0 : i32
    return %arg0, %c0_i32, %c0_i32_0 : i32, i32, i32
  }
}

</mosaic_0001>

<bundles_post_ra>
// kernel: tpu_custom_call.1
= control target key start
LH: loop header
LB: loop body
LE: loop exit
PB: predicated region body
PF: predicated region fallthrough
CT: control target
= control target key end

     0   :  { %v1221_v1 = vmov 0   ;;  %s1635_s0 = inlined_call_operand.vmem [shape: f32[2,8,256], index: 0, kind: input, shape index: {}]   ;;  %s1636_s1 = inlined_call_operand.vmem [shape: f32[8,1], index: 1, kind: input, shape index: {}]   ;;  %s1637_s2 = inlined_call_operand.vmem [shape: f32[8,1], index: 2, kind: input, shape index: {}]   ;;  %s1638_s3 = inlined_call_operand.vmem [shape: bf16[16,8], index: 3, kind: input, shape index: {}]   ;;  %s1639_s4 = inlined_call_operand.vmem [shape: f32[16,1], index: 4, kind: input, shape index: {}]   ;;  %s1640_s5 = inlined_call_operand.vmem [shape: bf16[16,144], index: 5, kind: input, shape index: {}]   ;;  %s1641_s6 = inlined_call_operand.vmem [shape: f32[16,1], index: 6, kind: input, shape index: {}]   ;;  %s1642_s7 = inlined_call_operand.vmem [shape: bf16[8,16], index: 7, kind: input, shape index: {}]   ;;  %s1643_s8 = inlined_call_operand.hbm [shape: f32[2,8,256], index: 8, kind: output, shape index: {}]  }
   0x1   :  { %v31_v0 = vld [vmem:[%s1636_s1] sm:$0xff]  ;;  %1011 = vset.pattern.permute.xlu0 %v1221_v1  ;;  %155 = vmatprep.mubr.bf16.mxu1 %v1221_v1 }
   0x2   :  { %81 = vperm.xlu0 %1011, %v31_v0   ;;  %1012 = vset.pattern.permute.xlu1 %v1221_v1  ;;  %v32_v2 = vld [vmem:[%s1637_s2] sm:$0xff] }
   0x3   :  { %511 = vmatprep.mubr.bf16.mxu0 %v1221_v1 }
   0x4   :  { %13 = vsyncpa [#allocation4], 0  ;;  %v33_v3 = vld [vmem:[%s1639_s4] sm:$0xff]  ;;  %v34_v4 = vld [vmem:[%s1639_s4 + $0x8] sm:$0xff]  ;;  %v1222_v5 = vmov 0.0   ;;  %s1223_s12 = smov 17   ;;  %v42_v46 = vlaneseq }
   0x5   :  { %99 = vperm.xlu1 %1012, %v33_v3   ;;  %v77_v6 = vld [vmem:[%s1635_s0] sm:$0xff]  ;;  %v78_v7 = vld [vmem:[%s1635_s0 + $0x8] sm:$0xff]  ;;  %vm116_vm0 = vcmask 1043456   ;;  %vm112_vm1 = vcmask 64512   ;;  %v1224_v20 = vmov 0.0|0.0   ;;  %s1225_s17 = smov 16  }
   0x6   :  { %88 = vperm.xlu0 %1011, %v32_v2   ;;  %v1324_v19 = vld [vmem:[%s1638_s3] sm:$0xff]   ;;  %s1226_s18 = smov 15   ;;  %s1227_s3 = smov 1   ;;  %vm385_vm2 = vcmask 130048   ;;  %v36_v44 = vld [vmem:[%s1641_s6 + $0x8] sm:$0xff]  ;;  %v43_v47 = vand.u32 127, %v42_v46 }
   0x7   :  { %s1228_s19 = smov 127   ;;  %s1229_s20 = smov 113   ;;  %v1373_v42 = vld [vmem:[%s1640_s5 + $0x4] ss:$8 sps:$4 sm:$0xff]   ;;  %vm202_vm3 = vcmask 138240   ;;  %vm236_vm8 = vcmask 121856  }
   0x8   :  { %s1230_s21 = smov 112   ;;  %s1231_s24 = smov 111   ;;  %v35_v43 = vld [vmem:[%s1641_s6] sm:$0xff]  ;;  %v44_v50 = vadd.s32 128, %v43_v47  ;;  %v49_v54 = vand.u32 15, %v43_v47  ;;  %vm263_vm12 = vcmask 7168  }
   0x9   :  { %104 = vperm.xlu1 %1012, %v34_v4   ;;  %vm304_vm14 = vcmask 1039360   ;;  %vm331_vm15 = vcmask 924672  }
   0xa   :  { %1014 = vrot.lane.b32.xlu0 %v1222_v5, %s1223_s12  ;;  %v56_v53 = vand.u32 15, %v44_v50  ;;  %vm69_vm5 = vcmp.ge.s32.totalorder %v49_v54, 1  ;;  %vm1410_vm10 = vcmp.le.s32.totalorder %v49_v54, 14 }
   0xb   :  { %vm1398_vm7 = vmpackc.low %vm69_vm5, %vm69_vm5  ;;  %vm361_vm5 = vcmask 908288  }
   0xc   :  { %vm70_vm4 = vcmp.ge.s32.totalorder %v56_v53, 1  ;;  %vm72_vm9 = vcmp.le.s32.totalorder %v56_v53, 14  ;;  %vm1428_vm13 = vmpackc.low %vm1410_vm10, %vm1410_vm10 }
   0xd   :  { %379 = vrot.lane.b32.xlu1 %v1224_v20, %s1225_s17  ;;  %vm1394_vm6 = vmpackc.low %vm70_vm4, %vm70_vm4  ;;  %vm399_vm4 = vcmask 916480  }
   0xe   :  { %1019 = vrot.lane.b32.xlu0 %v1222_v5, %s1226_s18  ;;  %vm1416_vm11 = vmpackc.low %vm72_vm9, %vm72_vm9 }
  0x81   :  { %v1303_v8 = vpop.permute.xlu0 %81 }
  0x82   :  { %v84_v9 = vmul.f32 %v1303_v8, %v77_v6  ;;  %v85_v10 = vmul.f32 %v1303_v8, %v78_v7 }
  0x84   :  { %v1332_v21 = vpop.permute.xlu1 %99 }
  0x85   :  { %v1307_v11 = vpop.permute.xlu0 %88 }
  0x86   :  { %v92_v12 = vadd.f32 %v1307_v11, %v85_v10  ;;  %v91_v13 = vadd.f32 %v1307_v11, %v84_v9 }
  0x88   :  { %v1311_v14 = vmax.f32 %v92_v12, 0.0  ;;  %v1313_v15 = vmax.f32 %v91_v13, 0.0  ;;  %v1334_v23 = vpop.permute.xlu1 %104 }
  0x89   :  { %v1015_v45 = vpop.permute.xlu0 %1014 }
  0x8a   :  { %v96_v16 = vpack.c.bf16 %v1311_v14, %v1311_v14  ;;  %v95_v17 = vpack.c.bf16 %v1313_v15, %v1313_v15  ;;  %v1017_v57 = vunpack.i.h.bf16 %v1015_v45  ;;  %v1016_v60 = vunpack.i.l.bf16 %v1015_v45 }
  0x8c   :  { %914 = vmatprep.subr.msk.bf16.mxu1 %vm116_vm0, %v96_v16  ;;  %v118_v18 = vsel %vm116_vm0, %v95_v17, 0  ;;  %v380_v48 = vpop.permute.xlu1 %379 }
  0x8d   :  { %124 = vmatpush1.bf16.msra.mxu1 %v118_v18  ;;  %v1020_v49 = vpop.permute.xlu0 %1019 }
  0x90   :  { %915 = vmatmul.mubr.msk.bf16.vlgmr.msra.gmra.mrb[0].mxu1 %vm112_vm1, %v1324_v19 }
  0x91   :  { %954 = vmatprep.mubr.msk.bf16.mxu1 %vm385_vm2, %v1373_v42 }
 0x163   :  { %v157_v22 = vpop.f32.mrb[0].mxu1 }
 0x164   :  { %v158_v24 = vadd.f32 %v157_v22, %v1332_v21  ;;  %v159_v25 = vpop.f32.mrb[1].mxu1  ;;  %v1022_v22 = vunpack.i.h.bf16 %v1020_v49 }
 0x165   :  { %v160_v26 = vadd.f32 %v159_v25, %v1332_v21  ;;  %v161_v27 = vpop.f32.mrb[2].mxu1 }
 0x166   :  { %v166_v28 = vmax.f32 %v158_v24, 0.0  ;;  %v162_v29 = vadd.f32 %v161_v27, %v1334_v23  ;;  %v163_v30 = vpop.f32.mrb[3].mxu1 }
 0x167   :  { %v167_v31 = vmax.f32 %v160_v26, 0.0  ;;  %v164_v32 = vadd.f32 %v163_v30, %v1334_v23 }
 0x168   :  { %v168_v33 = vmax.f32 %v162_v29, 0.0 }
 0x169   :  { %v169_v34 = vmax.f32 %v164_v32, 0.0  ;;  %v1033_v35 = vpack.i.bf16 %v167_v31, %v166_v28  ;;  %v1058_v40 = vpack.i.bf16 %v1222_v5, %v167_v31 }
 0x16a   :  { %v1340_v36 = vpack.c.bf16 %v168_v33, %v166_v28  ;;  %v1068_v37 = vpack.i.bf16 %v168_v33, %v166_v28 }
 0x16b   :  { %1034 = vrot.lane.b32.xlu1 %v1033_v35, %s1227_s3  ;;  %1024 = vrot.lane.b32.xlu0 %v1033_v35, %s1223_s12  ;;  %v1038_v38 = vpack.i.bf16 %v169_v34, %v168_v33  ;;  %v1344_v39 = vpack.c.bf16 %v169_v34, %v167_v31  ;;  %v1063_v41 = vpack.i.bf16 %v1222_v5, %v169_v34 }
 0x16f   :  { %1039 = vrot.lane.b32.xlu1 %v1038_v38, %s1223_s12  ;;  %1029 = vrot.lane.b32.xlu0 %v1033_v35, %s1226_s18 }
 0x173   :  { %1044 = vrot.lane.b32.xlu1 %v1038_v38, %s1226_s18  ;;  %383 = vrot.lane.b32.xlu0 %v1344_v39, %s1225_s17 }
 0x177   :  { %1049 = vrot.lane.b32.xlu0 %v1038_v38, %s1227_s3  ;;  %381 = vrot.lane.b32.xlu1 %v1340_v36, %s1225_s17 }
 0x17b   :  { %1059 = vrot.lane.b32.xlu0 %v1058_v40, %s1228_s19  ;;  %1054 = vrot.lane.b32.xlu1 %v1222_v5, %s1227_s3 }
 0x17f   :  { %1069 = vrot.lane.b32.xlu0 %v1068_v37, %s1228_s19  ;;  %1064 = vrot.lane.b32.xlu1 %v1063_v41, %s1228_s19 }
 0x183   :  { %1079 = vrot.lane.b32.xlu0 %v1063_v41, %s1229_s20  ;;  %1074 = vrot.lane.b32.xlu1 %v1058_v40, %s1229_s20 }
 0x187   :  { %393 = vrot.lane.b32.xlu0 %v1340_v36, %s1230_s21  ;;  %1084 = vrot.lane.b32.xlu1 %v1068_v37, %s1229_s20 }
 0x18b   :  { %395 = vrot.lane.b32.xlu0 %v1344_v39, %s1230_s21  ;;  %397 = vrot.lane.b32.xlu1 %v1224_v20, %s1230_s21 }
 0x18f   :  { %1094 = vrot.lane.b32.xlu0 %v1063_v41, %s1231_s24  ;;  %1089 = vrot.lane.b32.xlu1 %v1058_v40, %s1231_s24 }
 0x193   :  { %406 = vperm.xlu0 %1011, %v35_v43   ;;  %1099 = vrot.lane.b32.xlu1 %v1068_v37, %s1231_s24  ;;  %v1021_v37 = vunpack.i.l.bf16 %v1020_v49 }
 0x197   :  { %411 = vperm.xlu1 %1012, %v36_v44   ;;  %1104 = vrot.lane.b32.xlu0 %v1222_v5, %s1223_s12 }
 0x19b   :  { %781 = vrot.lane.b32.xlu1 %v1224_v20, %s1225_s17  ;;  %1109 = vrot.lane.b32.xlu0 %v1222_v5, %s1226_s18 }
 0x1dd   :  { %v1388_v51 = vpop.permute.xlu1 %1034  ;;  %v1025_v52 = vpop.permute.xlu0 %1024 }
 0x1de   :  { %v1027_v55 = vunpack.i.h.bf16 %v1025_v52  ;;  %v1026_v56 = vunpack.i.l.bf16 %v1025_v52  ;;  %v1037_v25 = vunpack.i.h.bf16 %v1388_v51  ;;  %v1036_v26 = vunpack.i.l.bf16 %v1388_v51 }
 0x1e0   :  { %v203_v63 = vsel %vm202_vm3, %v1016_v60, %v1026_v56  ;;  %v204_v0 = vsel %vm202_vm3, %v1026_v56, %v1027_v55  ;;  %v265_v47 = vsel %vm263_vm12, %v1036_v26, %v1037_v25 }
 0x1e1   :  { %v1040_v58 = vpop.permute.xlu1 %1039  ;;  %v1030_v59 = vpop.permute.xlu0 %1029 }
 0x1e2   :  { %v1042_v61 = vunpack.i.h.bf16 %v1040_v58  ;;  %v1041_v62 = vunpack.i.l.bf16 %v1040_v58  ;;  %v1032_v9 = vunpack.i.h.bf16 %v1030_v59  ;;  %v1031_v10 = vunpack.i.l.bf16 %v1030_v59 }
 0x1e4   :  { %v205_v2 = vsel %vm202_vm3, %v1017_v57, %v1041_v62  ;;  %v206_v3 = vsel %vm202_vm3, %v1041_v62, %v1042_v61  ;;  %v238_v27 = vsel %vm236_vm8, %v1031_v10, %v1032_v9  ;;  %v237_v43 = vsel %vm236_vm8, %v1021_v37, %v1031_v10 }
 0x1e5   :  { %v919_v6 = vpack.c.bf16 %v206_v3, %v204_v0  ;;  %v922_v7 = vpack.c.bf16 %v205_v2, %v203_v63  ;;  %v1045_v12 = vpop.permute.xlu1 %1044  ;;  %v384_v13 = vpop.permute.xlu0 %383 }
 0x1e6   :  { %v1047_v17 = vunpack.i.h.bf16 %v1045_v12  ;;  %v1046_v18 = vunpack.i.l.bf16 %v1045_v12 }
 0x1e7   :  { %920 = vmatprep.subr.msk.bf16.mxu1 %vm1394_vm6, %v919_v6 }
 0x1e8   :  { %v240_v24 = vsel %vm236_vm8, %v1046_v18, %v1047_v17  ;;  %923 = vmatpush1.bf16.msk.msra.mxu1 %vm1398_vm7, %v922_v7  ;;  %v239_v38 = vsel %vm236_vm8, %v1022_v22, %v1046_v18 }
 0x1e9   :  { %v382_v28 = vpop.permute.xlu1 %381  ;;  %v1050_v29 = vpop.permute.xlu0 %1049  ;;  %v925_v40 = vpack.c.bf16 %v240_v24, %v238_v27 }
 0x1ea   :  { %v386_v31 = vsel %vm385_vm2, %v380_v48, %v382_v28  ;;  %v1052_v32 = vunpack.i.h.bf16 %v1050_v29  ;;  %v1051_v33 = vunpack.i.l.bf16 %v1050_v29  ;;  %v387_v34 = vsel %vm385_vm2, %v382_v28, %v384_v13 }
 0x1eb   :  { %429 = vmatprep.subr.bf16.mxu1 %v387_v34  ;;  %v928_v48 = vpack.c.bf16 %v239_v38, %v237_v43 }
 0x1ec   :  { %v267_v41 = vsel %vm263_vm12, %v1051_v33, %v1052_v32  ;;  %430 = vmatpush1.bf16.msra.mxu1 %v386_v31 }
 0x1ed   :  { %v1055_v44 = vpop.permute.xlu1 %1054  ;;  %v1060_v45 = vpop.permute.xlu0 %1059  ;;  %926 = vmatprep.subr.msk.bf16.mxu1 %vm1416_vm11, %v925_v40  ;;  %v931_v51 = vpack.c.bf16 %v267_v41, %v265_v47 }
 0x1ee   :  { %v1057_v49 = vunpack.i.h.bf16 %v1055_v44  ;;  %v1056_v50 = vunpack.i.l.bf16 %v1055_v44  ;;  %v1062_v55 = vunpack.i.h.bf16 %v1060_v45  ;;  %v1061_v56 = vunpack.i.l.bf16 %v1060_v45 }
 0x1f0   :  { %v264_v52 = vsel %vm263_vm12, %v1056_v50, %v1036_v26  ;;  %v266_v53 = vsel %vm263_vm12, %v1057_v49, %v1051_v33  ;;  %929 = vmatpush1.bf16.msk.msra.mxu1 %vm1428_vm13, %v928_v48  ;;  %v306_v0 = vsel %vm304_vm14, %v1061_v56, %v1062_v55  ;;  %v1470_v55 = vld [vmem:[%s1640_s5] ss:$8 sps:$4 sm:$0xff]  }
 0x1f1   :  { %v934_v54 = vpack.c.bf16 %v266_v53, %v264_v52  ;;  %v1065_v57 = vpop.permute.xlu1 %1064  ;;  %v1070_v58 = vpop.permute.xlu0 %1069  ;;  %932 = vmatprep.subr.msk.bf16.mxu1 %vm1394_vm6, %v931_v51 }
 0x1f2   :  { %v1067_v59 = vunpack.i.h.bf16 %v1065_v57  ;;  %v1066_v60 = vunpack.i.l.bf16 %v1065_v57  ;;  %v1072_v61 = vunpack.i.h.bf16 %v1070_v58  ;;  %v1071_v62 = vunpack.i.l.bf16 %v1070_v58  ;;  %v957_v57 = vld [vmem:[%s1635_s0 + $0x18] sm:$0xff] }
 0x1f4   :  { %v308_v63 = vsel %vm304_vm14, %v1066_v60, %v1067_v59  ;;  %935 = vmatpush1.bf16.msk.msra.mxu1 %vm1398_vm7, %v934_v54  ;;  %v307_v13 = vsel %vm304_vm14, %v1072_v61, %v1066_v60  ;;  %v305_v17 = vsel %vm304_vm14, %v1071_v62, %v1061_v56  ;;  %v956_v56 = vld [vmem:[%s1635_s0 + $0x10] sm:$0xff]  ;;  %v526_v59 = vmul.f32 %v957_v57, %v1303_v8 }
 0x1f5   :  { %v1075_v2 = vpop.permute.xlu1 %1074  ;;  %v1080_v3 = vpop.permute.xlu0 %1079  ;;  %435 = vmatprep.subr.bf16.mxu1 %v1344_v39  ;;  %v937_v12 = vpack.c.bf16 %v308_v63, %v306_v0  ;;  %v940_v39 = vpack.c.bf16 %v307_v13, %v305_v17  ;;  %v525_v58 = vmul.f32 %v956_v56, %v1303_v8 }
 0x1f6   :  { %v1077_v6 = vunpack.i.h.bf16 %v1075_v2  ;;  %v1076_v7 = vunpack.i.l.bf16 %v1075_v2  ;;  %v1082_v9 = vunpack.i.h.bf16 %v1080_v3  ;;  %v1081_v10 = vunpack.i.l.bf16 %v1080_v3 }
 0x1f7   :  { %v527_v0 = vadd.f32 %v525_v58, %v1307_v11  ;;  %v528_v2 = vadd.f32 %v526_v59, %v1307_v11 }
 0x1f8   :  { %v333_v18 = vsel %vm331_vm15, %v1076_v7, %v1077_v6  ;;  %v335_v22 = vsel %vm331_vm15, %v1081_v10, %v1082_v9  ;;  %436 = vmatpush1.bf16.msra.mxu1 %v1340_v36 }
 0x1f9   :  { %v1085_v24 = vpop.permute.xlu1 %1084  ;;  %v394_v25 = vpop.permute.xlu0 %393  ;;  %938 = vmatprep.subr.msk.bf16.mxu1 %vm1416_vm11, %v937_v12  ;;  %v943_v28 = vpack.c.bf16 %v335_v22, %v333_v18  ;;  %v1494_v17 = vmax.f32 %v527_v0, 0.0  ;;  %v1496_v18 = vmax.f32 %v528_v2, 0.0 }
 0x1fa   :  { %v1087_v26 = vunpack.i.h.bf16 %v1085_v24  ;;  %v1086_v27 = vunpack.i.l.bf16 %v1085_v24 }
 0x1fc   :  { %v332_v29 = vsel %vm331_vm15, %v1086_v27, %v1076_v7  ;;  %v334_v30 = vsel %vm331_vm15, %v1087_v26, %v1081_v10  ;;  %941 = vmatpush1.bf16.msk.msra.mxu1 %vm1428_vm13, %v940_v39  ;;  %v532_v39 = vpack.c.bf16 %v1496_v18, %v1496_v18  ;;  %v531_v26 = vpack.c.bf16 %v1494_v17, %v1494_v17  ;;  %v1505_v27 = vld [vmem:[%s1642_s7] sm:$0xf]  ;;  %s1232_s7 = smov [#allocation3]  }
 0x1fd   :  { %v946_v31 = vpack.c.bf16 %v334_v30, %v332_v29  ;;  %v398_v32 = vpop.permute.xlu1 %397  ;;  %v396_v36 = vpop.permute.xlu0 %395  ;;  %944 = vmatprep.subr.msk.bf16.mxu1 %vm1394_vm6, %v943_v28  ;;  %s902_s11 = sshll.u32 %s1232_s7, 4  ;;  %s903_s11 = int_to_ptr.vmem [resolvable:$true] %s902_s11 }
 0x1fe   :  { %v401_v33 = vsel %vm399_vm4, %v396_v36, %v398_v32  ;;  %v400_v44 = vsel %vm399_vm4, %v394_v25, %v396_v36  ;;  %v534_v28 = vsel %vm116_vm0, %v531_v26, 0  ;;  %p1202_p1 = scmp.lt.s32.totalorder %s903_s11, %s903_s11 }
 0x200   :  { %947 = vmatpush1.bf16.msk.msra.mxu1 %vm1398_vm7, %v946_v31 }
 0x201   :  { %v1090_v34 = vpop.permute.xlu1 %1089  ;;  %v1095_v37 = vpop.permute.xlu0 %1094  ;;  %441 = vmatprep.subr.bf16.mxu1 %v401_v33 }
 0x202   :  { %v1092_v38 = vunpack.i.h.bf16 %v1090_v34  ;;  %v1091_v40 = vunpack.i.l.bf16 %v1090_v34  ;;  %v1097_v41 = vunpack.i.h.bf16 %v1095_v37  ;;  %v1096_v43 = vunpack.i.l.bf16 %v1095_v37 }
 0x204   :  { %v363_v45 = vsel %vm361_vm5, %v1091_v40, %v1092_v38  ;;  %v365_v47 = vsel %vm361_vm5, %v1096_v43, %v1097_v41  ;;  %442 = vmatpush1.bf16.msra.mxu1 %v400_v44 }
 0x205   :  { %v949_v48 = vpack.c.bf16 %v365_v47, %v363_v45  ;;  %v1100_v49 = vpop.permute.xlu1 %1099 }
 0x206   :  { %v1102_v50 = vunpack.i.h.bf16 %v1100_v49  ;;  %v1101_v51 = vunpack.i.l.bf16 %v1100_v49 }
 0x207   :  { %950 = vmatprep.subr.msk.bf16.mxu1 %vm1416_vm11, %v949_v48 }
 0x208   :  { %v362_v52 = vsel %vm361_vm5, %v1101_v51, %v1091_v40  ;;  %v364_v53 = vsel %vm361_vm5, %v1102_v50, %v1096_v43 }
 0x209   :  { %v952_v54 = vpack.c.bf16 %v364_v53, %v362_v52 }
 0x20b   :  { %953 = vmatpush1.bf16.msk.msra.mxu1 %vm1428_vm13, %v952_v54 }
 0x20e   :  { %460 = vmatmul.mubr.bf16.vlgmr.msra.gmra.mrb[4].mxu1 %v1470_v55 }
 0x20f   :  { %885 = vmatprep.mubr.bf16.mxu1 %v1221_v1 }
 0x212   :  { %v1484_v60 = vpop.permute.xlu0 %406 }
 0x216   :  { %v1489_v3 = vpop.permute.xlu1 %411 }
 0x21a   :  { %v782_v51 = vpop.permute.xlu1 %781 }
 0x2e1   :  { %v461_v61 = vpop.f32.mrb[4].mxu1 }
 0x2e2   :  { %v462_v62 = vadd.f32 %v461_v61, %v1484_v60  ;;  %v463_v63 = vpop.f32.mrb[5].mxu1 }
 0x2e3   :  { %v464_v6 = vadd.f32 %v463_v63, %v1484_v60  ;;  %v465_v7 = vpop.f32.mrb[6].mxu1 }
 0x2e4   :  { %v466_v9 = vadd.f32 %v465_v7, %v1489_v3  ;;  %v467_v10 = vpop.f32.mrb[7].mxu1  ;;  %v470_v12 = vmax.f32 %v462_v62, 0.0 }
 0x2e5   :  { %v468_v8 = vadd.f32 %v467_v10, %v1489_v3  ;;  %v471_v22 = vmax.f32 %v464_v6, 0.0 }
 0x2e6   :  { %v472_v13 = vmax.f32 %v466_v9, 0.0 }
 0x2e7   :  { %v473_v24 = vmax.f32 %v468_v8, 0.0 }
 0x2e8   :  { %v474_v25 = vpack.c.bf16 %v472_v13, %v470_v12 }
 0x2e9   :  { %v475_v11 = vpack.c.bf16 %v473_v24, %v471_v22 }
 0x2eb   :  { %479 = vmatprep.subr.bf16.mxu0 %v475_v11 }
 0x2ec   :  { %480 = vmatpush1.bf16.msra.mxu0 %v474_v25 }
 0x2ed   :  { %958 = vmatprep.subr.msk.bf16.mxu0 %vm116_vm0, %v532_v39 }
 0x2ef   :  { %955 = vmatmul.mubr.msk.bf16.vlgmr.msra.gmra.mrb[0].mxu0 %vm385_vm2, %v1505_v27 }
 0x2f0   :  { %540 = vmatpush1.bf16.msra.mxu0 %v534_v28  ;;  %571 = vmatprep.mubr.bf16.mxu0 %v1221_v1 }
 0x2f7   :  { %959 = vmatmul.mubr.msk.bf16.vlgmr.msra.gmra.mrb[4].mxu0 %vm112_vm1, %v1324_v19 }
 0x2f8   :  { %996 = vmatprep.mubr.msk.bf16.mxu0 %vm385_vm2, %v1373_v42 }
 0x3c2   :  { %v513_v29 = vpop.f32.mrb[0].mxu0 }
 0x3c3   :  { %v514_v30 = vadd.f32 %v513_v29, %v1313_v15  ;;  %v515_v31 = vpop.f32.mrb[1].mxu0 }
 0x3c4   :  { %v516_v32 = vadd.f32 %v515_v31, %v1311_v14  ;;  %v517_v36 = vpop.f32.mrb[2].mxu0 }
 0x3c5   :  { %520 = vst [vmem:[#allocation3] sm:$0xff] %v514_v30  ;;  %v518_v1 = vpop.f32.mrb[3].mxu0 }
 0x3c6   :  { %521 = vst [vmem:[#allocation3 + $0x8] sm:$0xff] %v516_v32 }
 0x3ca   :  { %v573_v19 = vpop.f32.mrb[4].mxu0 }
 0x3cb   :  { %v574_v33 = vadd.f32 %v573_v19, %v1332_v21  ;;  %v575_v42 = vpop.f32.mrb[5].mxu0 }
 0x3cc   :  { %v576_v34 = vadd.f32 %v575_v42, %v1332_v21  ;;  %v577_v37 = vpop.f32.mrb[6].mxu0 }
 0x3cd   :  { %v582_v38 = vmax.f32 %v574_v33, 0.0  ;;  %v578_v40 = vadd.f32 %v577_v37, %v1334_v23  ;;  %v579_v41 = vpop.f32.mrb[7].mxu0 }
 0x3ce   :  { %v583_v43 = vmax.f32 %v576_v34, 0.0  ;;  %v580_v15 = vadd.f32 %v579_v41, %v1334_v23 }
 0x3cf   :  { %v584_v44 = vmax.f32 %v578_v40, 0.0 }
 0x3d0   :  { %v585_v14 = vmax.f32 %v580_v15, 0.0  ;;  %v1123_v45 = vpack.i.bf16 %v583_v43, %v582_v38  ;;  %v1148_v23 = vpack.i.bf16 %v1222_v5, %v583_v43 }
 0x3d1   :  { %v1526_v47 = vpack.c.bf16 %v584_v44, %v582_v38  ;;  %v1158_v48 = vpack.i.bf16 %v584_v44, %v582_v38 }
 0x3d2   :  { %1124 = vrot.lane.b32.xlu1 %v1123_v45, %s1227_s3  ;;  %1114 = vrot.lane.b32.xlu0 %v1123_v45, %s1223_s12  ;;  %v1128_v49 = vpack.i.bf16 %v585_v14, %v584_v44  ;;  %v1530_v21 = vpack.c.bf16 %v585_v14, %v583_v43  ;;  %v1153_v50 = vpack.i.bf16 %v1222_v5, %v585_v14 }
 0x3d6   :  { %1129 = vrot.lane.b32.xlu1 %v1128_v49, %s1223_s12  ;;  %1119 = vrot.lane.b32.xlu0 %v1123_v45, %s1226_s18  ;;  %s1197_s12 = scalar_lea.vmem %s903_s11, 512 }
 0x3d7   :  { %p1198_p0 = scmp.ne.s32.totalorder %s903_s11, %s1197_s12  ;;  %p1203_p2 = scmp.lt.s32.totalorder %s1197_s12, %s1197_s12 }
 0x3d9   :  { %p1204_p3 = por %p1203_p2, %p1202_p1 }
 0x3da   :  { %1134 = vrot.lane.b32.xlu1 %v1128_v49, %s1226_s18  ;;  %785 = vrot.lane.b32.xlu0 %v1530_v21, %s1225_s17 }
 0x3db   :  { %p1205_p4 = pnand %p1204_p3, %p1198_p0 }
 0x3de   :  { %1139 = vrot.lane.b32.xlu0 %v1128_v49, %s1227_s3  ;;  %783 = vrot.lane.b32.xlu1 %v1526_v47, %s1225_s17 }
 0x3e2   :  { %1149 = vrot.lane.b32.xlu0 %v1148_v23, %s1228_s19  ;;  %1144 = vrot.lane.b32.xlu1 %v1222_v5, %s1227_s3  ;;  %v1105_v5 = vpop.permute.xlu0 %1104 }
 0x3e3   :  { %v1107_v61 = vunpack.i.h.bf16 %v1105_v5  ;;  %v1106_v62 = vunpack.i.l.bf16 %v1105_v5 }
 0x3e6   :  { %1159 = vrot.lane.b32.xlu0 %v1158_v48, %s1228_s19  ;;  %1154 = vrot.lane.b32.xlu1 %v1153_v50, %s1228_s19  ;;  %v1110_v52 = vpop.permute.xlu0 %1109 }
 0x3e7   :  { %v1112_v39 = vunpack.i.h.bf16 %v1110_v52  ;;  %v1111_v33 = vunpack.i.l.bf16 %v1110_v52 }
 0x3ea   :  { %1169 = vrot.lane.b32.xlu0 %v1153_v50, %s1229_s20  ;;  %1164 = vrot.lane.b32.xlu1 %v1148_v23, %s1229_s20 }
 0x3ee   :  { %794 = vrot.lane.b32.xlu0 %v1526_v47, %s1230_s21  ;;  %1174 = vrot.lane.b32.xlu1 %v1158_v48, %s1229_s20 }
 0x3f2   :  { %796 = vrot.lane.b32.xlu0 %v1530_v21, %s1230_s21  ;;  %798 = vrot.lane.b32.xlu1 %v1224_v20, %s1230_s21 }
 0x3f6   :  { %1184 = vrot.lane.b32.xlu0 %v1153_v50, %s1231_s24  ;;  %1179 = vrot.lane.b32.xlu1 %v1148_v23, %s1231_s24 }
 0x3fa   :  { %1189 = vrot.lane.b32.xlu1 %v1158_v48, %s1231_s24 }
 0x444   :  { %v1125_v53 = vpop.permute.xlu1 %1124  ;;  %v1115_v54 = vpop.permute.xlu0 %1114 }
 0x445   :  { %v1117_v56 = vunpack.i.h.bf16 %v1115_v54  ;;  %v1116_v57 = vunpack.i.l.bf16 %v1115_v54  ;;  %v1127_v26 = vunpack.i.h.bf16 %v1125_v53  ;;  %v1126_v28 = vunpack.i.l.bf16 %v1125_v53 }
 0x447   :  { %v614_v20 = vsel %vm202_vm3, %v1106_v62, %v1116_v57  ;;  %v615_v2 = vsel %vm202_vm3, %v1116_v57, %v1117_v56  ;;  %v670_v43 = vsel %vm263_vm12, %v1126_v28, %v1127_v26 }
 0x448   :  { %v1130_v58 = vpop.permute.xlu1 %1129  ;;  %v1120_v59 = vpop.permute.xlu0 %1119 }
 0x449   :  { %v1132_v63 = vunpack.i.h.bf16 %v1130_v58  ;;  %v1131_v0 = vunpack.i.l.bf16 %v1130_v58  ;;  %v1122_v8 = vunpack.i.h.bf16 %v1120_v59  ;;  %v1121_v12 = vunpack.i.l.bf16 %v1120_v59 }
 0x44b   :  { %v616_v6 = vsel %vm202_vm3, %v1107_v61, %v1131_v0  ;;  %v617_v7 = vsel %vm202_vm3, %v1131_v0, %v1132_v63  ;;  %v644_v29 = vsel %vm236_vm8, %v1121_v12, %v1122_v8  ;;  %v643_v38 = vsel %vm236_vm8, %v1111_v33, %v1121_v12 }
 0x44c   :  { %v961_v9 = vpack.c.bf16 %v617_v7, %v615_v2  ;;  %v964_v10 = vpack.c.bf16 %v616_v6, %v614_v20  ;;  %v1135_v13 = vpop.permute.xlu1 %1134  ;;  %v786_v22 = vpop.permute.xlu0 %785 }
 0x44d   :  { %v1137_v24 = vunpack.i.h.bf16 %v1135_v13  ;;  %v1136_v25 = vunpack.i.l.bf16 %v1135_v13 }
 0x44e   :  { %962 = vmatprep.subr.msk.bf16.mxu0 %vm1394_vm6, %v961_v9 }
 0x44f   :  { %v646_v11 = vsel %vm236_vm8, %v1136_v25, %v1137_v24  ;;  %965 = vmatpush1.bf16.msk.msra.mxu0 %vm1398_vm7, %v964_v10  ;;  %v645_v42 = vsel %vm236_vm8, %v1112_v39, %v1136_v25 }
 0x450   :  { %v1140_v30 = vpop.permute.xlu0 %1139  ;;  %v784_v31 = vpop.permute.xlu1 %783  ;;  %v967_v34 = vpack.c.bf16 %v646_v11, %v644_v29  ;;  %v970_v15 = vpack.c.bf16 %v645_v42, %v643_v38 }
 0x451   :  { %v1142_v32 = vunpack.i.h.bf16 %v1140_v30  ;;  %v1141_v36 = vunpack.i.l.bf16 %v1140_v30  ;;  %v787_v1 = vsel %vm385_vm2, %v782_v51, %v784_v31  ;;  %v788_v19 = vsel %vm385_vm2, %v784_v31, %v786_v22 }
 0x452   :  { %806 = vmatprep.subr.bf16.mxu0 %v788_v19 }
 0x453   :  { %v672_v37 = vsel %vm263_vm12, %v1141_v36, %v1142_v32  ;;  %807 = vmatpush1.bf16.msra.mxu0 %v787_v1 }
 0x454   :  { %v1150_v40 = vpop.permute.xlu0 %1149  ;;  %968 = vmatprep.subr.msk.bf16.mxu0 %vm1416_vm11, %v967_v34  ;;  %v1145_v41 = vpop.permute.xlu1 %1144  ;;  %v973_v45 = vpack.c.bf16 %v672_v37, %v670_v43 }
 0x455   :  { %v1147_v44 = vunpack.i.h.bf16 %v1145_v41  ;;  %v1146_v14 = vunpack.i.l.bf16 %v1145_v41  ;;  %v1152_v23 = vunpack.i.h.bf16 %v1150_v40  ;;  %v1151_v50 = vunpack.i.l.bf16 %v1150_v40 }
 0x457   :  { %v671_v48 = vsel %vm263_vm12, %v1147_v44, %v1141_v36  ;;  %v669_v49 = vsel %vm263_vm12, %v1146_v14, %v1126_v28  ;;  %971 = vmatpush1.bf16.msk.msra.mxu0 %vm1428_vm13, %v970_v15  ;;  %v710_v59 = vsel %vm304_vm14, %v1151_v50, %v1152_v23 }
 0x458   :  { %v976_v5 = vpack.c.bf16 %v671_v48, %v669_v49  ;;  %v1160_v51 = vpop.permute.xlu0 %1159  ;;  %974 = vmatprep.subr.msk.bf16.mxu0 %vm1394_vm6, %v973_v45  ;;  %v1155_v52 = vpop.permute.xlu1 %1154 }
 0x459   :  { %v1157_v53 = vunpack.i.h.bf16 %v1155_v52  ;;  %v1156_v54 = vunpack.i.l.bf16 %v1155_v52  ;;  %v1162_v56 = vunpack.i.h.bf16 %v1160_v51  ;;  %v1161_v57 = vunpack.i.l.bf16 %v1160_v51 }
 0x45b   :  { %v712_v58 = vsel %vm304_vm14, %v1156_v54, %v1157_v53  ;;  %977 = vmatpush1.bf16.msk.msra.mxu0 %vm1398_vm7, %v976_v5  ;;  %v709_v6 = vsel %vm304_vm14, %v1161_v57, %v1151_v50  ;;  %v711_v7 = vsel %vm304_vm14, %v1162_v56, %v1156_v54 }
 0x45c   :  { %v1170_v61 = vpop.permute.xlu0 %1169  ;;  %v1165_v62 = vpop.permute.xlu1 %1164  ;;  %812 = vmatprep.subr.bf16.mxu0 %v1530_v21  ;;  %v979_v9 = vpack.c.bf16 %v712_v58, %v710_v59  ;;  %v982_v21 = vpack.c.bf16 %v711_v7, %v709_v6 }
 0x45d   :  { %v1172_v63 = vunpack.i.h.bf16 %v1170_v61  ;;  %v1171_v0 = vunpack.i.l.bf16 %v1170_v61  ;;  %v1167_v20 = vunpack.i.h.bf16 %v1165_v62  ;;  %v1166_v2 = vunpack.i.l.bf16 %v1165_v62 }
 0x45f   :  { %v738_v10 = vsel %vm331_vm15, %v1171_v0, %v1172_v63  ;;  %v736_v8 = vsel %vm331_vm15, %v1166_v2, %v1167_v20  ;;  %813 = vmatpush1.bf16.msra.mxu0 %v1526_v47 }
 0x460   :  { %v795_v12 = vpop.permute.xlu0 %794  ;;  %v1175_v13 = vpop.permute.xlu1 %1174  ;;  %980 = vmatprep.subr.msk.bf16.mxu0 %vm1416_vm11, %v979_v9  ;;  %v985_v25 = vpack.c.bf16 %v738_v10, %v736_v8 }
 0x461   :  { %v1177_v22 = vunpack.i.h.bf16 %v1175_v13  ;;  %v1176_v24 = vunpack.i.l.bf16 %v1175_v13 }
 0x463   :  { %v737_v11 = vsel %vm331_vm15, %v1177_v22, %v1171_v0  ;;  %v735_v39 = vsel %vm331_vm15, %v1176_v24, %v1166_v2  ;;  %983 = vmatpush1.bf16.msk.msra.mxu0 %vm1428_vm13, %v982_v21 }
 0x464   :  { %v988_v26 = vpack.c.bf16 %v737_v11, %v735_v39  ;;  %v797_v28 = vpop.permute.xlu0 %796  ;;  %v799_v29 = vpop.permute.xlu1 %798  ;;  %986 = vmatprep.subr.msk.bf16.mxu0 %vm1394_vm6, %v985_v25 }
 0x465   :  { %v801_v47 = vsel %vm399_vm4, %v797_v28, %v799_v29  ;;  %v800_v33 = vsel %vm399_vm4, %v795_v12, %v797_v28 }
 0x467   :  { %989 = vmatpush1.bf16.msk.msra.mxu0 %vm1398_vm7, %v988_v26 }
 0x468   :  { %v1185_v30 = vpop.permute.xlu0 %1184  ;;  %v1180_v31 = vpop.permute.xlu1 %1179  ;;  %818 = vmatprep.subr.bf16.mxu0 %v801_v47 }
 0x469   :  { %v1187_v32 = vunpack.i.h.bf16 %v1185_v30  ;;  %v1186_v36 = vunpack.i.l.bf16 %v1185_v30  ;;  %v1182_v1 = vunpack.i.h.bf16 %v1180_v31  ;;  %v1181_v19 = vunpack.i.l.bf16 %v1180_v31 }
 0x46b   :  { %v767_v42 = vsel %vm361_vm5, %v1186_v36, %v1187_v32  ;;  %v765_v34 = vsel %vm361_vm5, %v1181_v19, %v1182_v1  ;;  %819 = vmatpush1.bf16.msra.mxu0 %v800_v33 }
 0x46c   :  { %v991_v4 = vpack.c.bf16 %v767_v42, %v765_v34  ;;  %v1190_v37 = vpop.permute.xlu1 %1189 }
 0x46d   :  { %v1192_v16 = vunpack.i.h.bf16 %v1190_v37  ;;  %v1191_v38 = vunpack.i.l.bf16 %v1190_v37 }
 0x46e   :  { %992 = vmatprep.subr.msk.bf16.mxu0 %vm1416_vm11, %v991_v4 }
 0x46f   :  { %v766_v40 = vsel %vm361_vm5, %v1192_v16, %v1186_v36  ;;  %v764_v41 = vsel %vm361_vm5, %v1191_v38, %v1181_v19 }
 0x470   :  { %v994_v43 = vpack.c.bf16 %v766_v40, %v764_v41 }
 0x472   :  { %995 = vmatpush1.bf16.msk.msra.mxu0 %vm1428_vm13, %v994_v43 }
 0x475   :  { %837 = vmatmul.mubr.bf16.vlgmr.msra.gmra.mrb[8].mxu0 %v1470_v55 }
 0x548   :  { %v838_v15 = vpop.f32.mrb[8].mxu0 }
 0x549   :  { %v839_v44 = vadd.f32 %v838_v15, %v1484_v60  ;;  %v840_v14 = vpop.f32.mrb[9].mxu0 }
 0x54a   :  { %v841_v45 = vadd.f32 %v840_v14, %v1484_v60  ;;  %v842_v48 = vpop.f32.mrb[10].mxu0 }
 0x54b   :  { %v843_v35 = vadd.f32 %v842_v48, %v1489_v3  ;;  %v844_v49 = vpop.f32.mrb[11].mxu0  ;;  %v847_v50 = vmax.f32 %v839_v44, 0.0 }
 0x54c   :  { %v845_v23 = vadd.f32 %v844_v49, %v1489_v3  ;;  %v848_v51 = vmax.f32 %v841_v45, 0.0 }
 0x54d   :  { %v849_v5 = vmax.f32 %v843_v35, 0.0 }
 0x54e   :  { %v850_v52 = vmax.f32 %v845_v23, 0.0 }
 0x54f   :  { %v851_v46 = vpack.c.bf16 %v849_v5, %v847_v50 }
 0x550   :  { %v852_v53 = vpack.c.bf16 %v850_v52, %v848_v51 }
 0x552   :  { %853 = vmatprep.subr.bf16.mxu1 %v852_v53 }
 0x553   :  { %854 = vmatpush1.bf16.msra.mxu1 %v851_v46 }
 0x556   :  { %997 = vmatmul.mubr.msk.bf16.vlgmr.msra.gmra.mrb[8].mxu1 %vm385_vm2, %v1505_v27 }
 0x629   :  { %v887_v55 = vpop.f32.mrb[8].mxu1 }
 0x62a   :  { %v888_v60 = vadd.f32 %v887_v55, %v1494_v17  ;;  %v889_v54 = vpop.f32.mrb[9].mxu1 }
 0x62b   :  { %v890_v56 = vadd.f32 %v889_v54, %v1496_v18  ;;  %v891_v3 = vpop.f32.mrb[10].mxu1 }
 0x62c   :  { %895 = vst [vmem:[#allocation3 + $0x10] sm:$0xff] %v888_v60  ;;  %v892_v57 = vpop.f32.mrb[11].mxu1 }
 0x62d   :  { %896 = vst [vmem:[#allocation3 + $0x18] sm:$0xff] %v890_v56 }
 0x62e   :  { %1208 = shalt.err (!%p1205_p4)
}
 0x62f   :  { %s1209_s14 = scalar_lea.hbm %s1643_s8, 512 }
 0x630   :  { %p1210_p5 = scmp.ne.s32.totalorder %s1643_s8, %s1209_s14  ;;  %p1213_p6 = scmp.lt.u32.totalorder %s1209_s14, %s1643_s8 }
 0x632   :  { %p1215_p7 = pnand %p1213_p6, %p1210_p5 }
 0x634   :  { %1218 = shalt.err (!%p1215_p7)
}
 0x635   :  { %s1233_s3 = smov 256  }
 0x636   :  { %908 = dma.vmem_to_hbm [thread:$0]  %s903_s11, 512, %s1643_s8, [#allocation4], %s1233_s3, %s1233_s3, %s1225_s17  }
 0x637   :  { %1219 = dma.done.wait [#allocation4], 512  }
 0x638   :  { %1220 = vsyncadd [#allocation4], 4294966784 }
 0x639   :  { %912 = vsyncpa [#allocation4], 1 }

</bundles_post_ra>
